<compile_context>
chip_gen: v7x
topology: tpu7x:2x2x1
jax: 0.10.0
libtpu: 0.0.40
codegen_flags: <defaults>
</compile_context>

<pallas_src>
import functools

import jax
import jax.numpy as jnp
import numpy as np
from jax.experimental import pallas as pl
from jax.experimental.pallas import tpu as pltpu

EPS = 1e-5
LANES = 128
SUBLANES = 8


def _round_up(v, m):
    return (v + m - 1) // m * m


def _residual_kernel(m_count, stride_one, use_conv3, *refs):
    """Single-invocation kernel; everything resident in VMEM.

    Inputs (in order):
      xc [, xp, xn]            : (Cin_p, Mpad) mxu-dtype conv1 tap slabs
      valid, keep_prev, keep_next : (1, Mpad) f32 {0,1} masks
      w1c, w1p, w1n, b1, g1, be1
      w2c, w2p, w2n, b2, g2, be2
      [w3, b3]
      out_ref                  : (C_p, Mpad) f32 lane-dense output slab
    """
    idx = 0
    xc_ref = refs[idx]; idx += 1
    if not stride_one:
        xp_ref, xn_ref = refs[idx], refs[idx + 1]; idx += 2
    valid_ref, kprev_ref, knext_ref = refs[idx:idx + 3]; idx += 3
    (w1c_ref, w1p_ref, w1n_ref, b1_ref, g1_ref, be1_ref) = refs[idx:idx + 6]; idx += 6
    (w2c_ref, w2p_ref, w2n_ref, b2_ref, g2_ref, be2_ref) = refs[idx:idx + 6]; idx += 6
    if use_conv3:
        w3_ref, b3_ref = refs[idx], refs[idx + 1]; idx += 2
    out_ref = refs[idx]

    Mpad = out_ref.shape[1]
    inv_m = 1.0 / m_count                       # static python float

    valid = valid_ref[...]                      # (1, Mpad) f32
    keep_prev = kprev_ref[...]
    keep_next = knext_ref[...]

    mdt = xc_ref.dtype                          # MXU operand dtype (bf16 or f32)
    xc = xc_ref[...]                            # (Cin_p, Mpad)
    xc32 = xc.astype(jnp.float32)

    if stride_one:
        # prev/next conv1 taps via lane rolls (f32 rolls: safe layout, masks in f32)
        xp = (pltpu.roll(xc32, 1, axis=1) * keep_prev).astype(mdt)
        xn = (pltpu.roll(xc32, Mpad - 1, axis=1) * keep_next).astype(mdt)
    else:
        xp = xp_ref[...]
        xn = xn_ref[...]

    def mm(w_ref, a):
        return jnp.dot(w_ref[...], a, preferred_element_type=jnp.float32)

    # ---- conv1: three accumulating MXU matmuls (no (3Cin, Mpad) concat buffer) ----
    z1 = mm(w1c_ref, xc) + mm(w1p_ref, xp) + mm(w1n_ref, xn) + b1_ref[...]

    # ---- bn1: one-pass masked stats over the lane axis (padding cols excluded), relu ----
    z1m = z1 * valid
    s1 = jnp.sum(z1m, axis=1, keepdims=True)
    ss1 = jnp.sum(z1m * z1m, axis=1, keepdims=True)
    mu1 = s1 * inv_m
    var1 = ss1 * inv_m - mu1 * mu1
    scale1 = g1_ref[...] * jax.lax.rsqrt(var1 + EPS)
    shift1 = be1_ref[...] - mu1 * scale1
    y = jnp.maximum(z1 * scale1 + shift1, 0.0)              # (C_p, Mpad) f32

    # ---- conv2 (k=3, pad=1, stride=1): rolled taps + three accumulating matmuls ----
    y_prev = pltpu.roll(y, 1, axis=1) * keep_prev            # y[:, m-1]
    y_next = pltpu.roll(y, Mpad - 1, axis=1) * keep_next     # y[:, m+1]
    z2 = (mm(w2c_ref, y.astype(mdt))
          + mm(w2p_ref, y_prev.astype(mdt))
          + mm(w2n_ref, y_next.astype(mdt))
          + b2_ref[...])

    # ---- bn2 ----
    z2m = z2 * valid
    s2 = jnp.sum(z2m, axis=1, keepdims=True)
    ss2 = jnp.sum(z2m * z2m, axis=1, keepdims=True)
    mu2 = s2 * inv_m
    var2 = ss2 * inv_m - mu2 * mu2
    scale2 = g2_ref[...] * jax.lax.rsqrt(var2 + EPS)
    shift2 = be2_ref[...] - mu2 * scale2
    y2 = z2 * scale2 + shift2

    # ---- shortcut ----
    if use_conv3:
        sc = mm(w3_ref, xc) + b3_ref[...]
    else:
        sc = xc32                                            # identity (Cin_p == C_p)

    out_ref[...] = jnp.maximum(y2 + sc, 0.0)


def residual_forward(x, params, *, strides=1, use_1x1conv=False,
                     mxu_dtype=jnp.bfloat16):
    """x: (N, Cin, Lin) float32 in PyTorch NCL layout.  Returns (N, C, Lout)."""
    N, Cin, Lin = x.shape
    C = params["w1"].shape[0]                       # torch conv weight: (Cout, Cin, K)
    Lout = (Lin + 2 - 3) // strides + 1
    M = N * Lout
    Mpad = _round_up(M, LANES)
    Cin_p = _round_up(Cin, SUBLANES)
    C_p = _round_up(C, SUBLANES)
    stride_one = (strides == 1)
    if not use_1x1conv:
        assert stride_one and Cin == C, "identity shortcut needs matching shapes"

    # --- channels-first, rows(=N*Lout) on the lane axis ---
    x_cnl = jnp.transpose(x, (1, 0, 2)).astype(jnp.float32)          # (Cin, N, Lin)

    def pack(slab):      # (Cin, M) f32 -> (Cin_p, Mpad) mxu dtype, tile-aligned
        slab = jnp.pad(slab, ((0, Cin_p - Cin), (0, Mpad - M)))
        return slab.astype(mxu_dtype)

    if stride_one:
        # only the center tap travels to the kernel; prev/next are in-kernel rolls
        taps = [pack(x_cnl.reshape(Cin, M))]
    else:
        x_pad = jnp.pad(x_cnl, ((0, 0), (0, 0), (1, 1)))             # pad L by 1
        span = (Lout - 1) * strides + 1

        def tap(k):
            return x_pad[:, :, k:k + span:strides].reshape(Cin, M)

        taps = [pack(tap(1)), pack(tap(0)), pack(tap(2))]            # center, prev, next

    # --- host-side constant masks (no in-kernel iota / modulo) ---
    col = np.arange(Mpad)
    pos = col % Lout
    valid_np = col < M

    def fmask(m):
        return jnp.asarray(m.astype(np.float32)).reshape(1, Mpad)

    valid = fmask(valid_np)
    keep_prev = fmask(valid_np & (pos != 0))
    keep_next = fmask(valid_np & (pos != Lout - 1))

    # --- weight re-layout: per-tap (C_p, Cin_p) matrices, sublane-padded, MXU dtype ---
    def wmat(w, k, in_c, in_p):
        wk = jnp.pad(w[:, :, k].astype(jnp.float32),
                     ((0, C_p - C), (0, in_p - in_c)))
        return wk.astype(mxu_dtype)

    def cvec(v):
        return jnp.pad(v.astype(jnp.float32).reshape(-1, 1), ((0, C_p - C), (0, 0)))

    w1, w2 = params["w1"], params["w2"]
    args = list(taps) + [
        valid, keep_prev, keep_next,
        wmat(w1, 1, Cin, Cin_p), wmat(w1, 0, Cin, Cin_p), wmat(w1, 2, Cin, Cin_p),
        cvec(params["b1"]), cvec(params["g1"]), cvec(params["be1"]),
        wmat(w2, 1, C, C_p), wmat(w2, 0, C, C_p), wmat(w2, 2, C, C_p),
        cvec(params["b2"]), cvec(params["g2"]), cvec(params["be2"]),
    ]
    if use_1x1conv:
        args += [wmat(params["w3"], 0, Cin, Cin_p), cvec(params["b3"])]

    flops = 2 * Mpad * (3 * Cin_p * C_p + 3 * C_p * C_p
                        + (Cin_p * C_p if use_1x1conv else 0))
    bytes_accessed = sum(int(np.prod(a.shape)) * a.dtype.itemsize for a in args) \
        + C_p * Mpad * 4
    cost = pl.CostEstimate(flops=int(flops), transcendentals=2 * C_p,
                           bytes_accessed=int(bytes_accessed))

    out = pl.pallas_call(
        functools.partial(_residual_kernel, float(M), stride_one, use_1x1conv),
        out_shape=jax.ShapeDtypeStruct((C_p, Mpad), jnp.float32),
        in_specs=[pl.BlockSpec(memory_space=pltpu.MemorySpace.VMEM)] * len(args),
        out_specs=pl.BlockSpec(memory_space=pltpu.MemorySpace.VMEM),
        cost_estimate=cost,
    )(*args)

    # Back to PyTorch NCL layout.  For chains of blocks, stay in the lane-dense
    # (C_p, Mpad) layout between blocks and hoist this to model egress.
    out = out[:C, :M].reshape(C, N, Lout)
    return jnp.transpose(out, (1, 0, 2))


# ------------------------- pure-JAX reference -------------------------
def _ref_forward(x, params, *, strides, use_1x1conv):
    def conv1d(x, w, b, stride, pad):
        out = jax.lax.conv_general_dilated(
            x, w, window_strides=(stride,), padding=[(pad, pad)],
            dimension_numbers=("NCH", "OIH", "NCH"))
        return out + b[None, :, None]

    def bn(z, g, be):
        mu = jnp.mean(z, axis=(0, 2), keepdims=True)
        var = jnp.mean((z - mu) ** 2, axis=(0, 2), keepdims=True)
        return (z - mu) * jax.lax.rsqrt(var + EPS) * g[None, :, None] + be[None, :, None]

    y = jax.nn.relu(bn(conv1d(x, params["w1"], params["b1"], strides, 1),
                       params["g1"], params["be1"]))
    y = bn(conv1d(y, params["w2"], params["b2"], 1, 1), params["g2"], params["be2"])
    sc = conv1d(x, params["w3"], params["b3"], strides, 0) if use_1x1conv else x
    return jax.nn.relu(y + sc)


def _make_params(key, Cin, C, use_1x1conv):
    ks = jax.random.split(key, 8)
    p = {
        "w1": 0.1 * jax.random.normal(ks[0], (C, Cin, 3), jnp.float32),
        "b1": 0.1 * jax.random.normal(ks[1], (C,), jnp.float32),
        "w2": 0.1 * jax.random.normal(ks[2], (C, C, 3), jnp.float32),
        "b2": 0.1 * jax.random.normal(ks[3], (C,), jnp.float32),
        "g1": 1.0 + 0.1 * jax.random.normal(ks[4], (C,), jnp.float32),
        "be1": 0.1 * jax.random.normal(ks[5], (C,), jnp.float32),
        "g2": 1.0 + 0.1 * jax.random.normal(ks[6], (C,), jnp.float32),
        "be2": 0.1 * jax.random.normal(ks[7], (C,), jnp.float32),
    }
    if use_1x1conv:
        k3a, k3b = jax.random.split(jax.random.fold_in(key, 99))
        p["w3"] = 0.1 * jax.random.normal(k3a, (C, Cin, 1), jnp.float32)
        p["b3"] = 0.1 * jax.random.normal(k3b, (C,), jnp.float32)
    return p


if __name__ == "__main__":
    key = jax.random.PRNGKey(0)

    # Config A: downsampling block (use_1x1conv=True, stride=2)
    N, Cin, C, Lin = 2, 4, 8, 16
    x = jax.random.normal(jax.random.fold_in(key, 1), (N, Cin, Lin), jnp.float32)
    params = _make_params(jax.random.fold_in(key, 2), Cin, C, use_1x1conv=True)
    ref = _ref_forward(x, params, strides=2, use_1x1conv=True)

    out_f32 = residual_forward(x, params, strides=2, use_1x1conv=True,
                               mxu_dtype=jnp.float32)
    jax.block_until_ready(out_f32)
    np.testing.assert_allclose(np.asarray(out_f32), np.asarray(ref),
                               rtol=1e-3, atol=1e-3)

    out_bf16 = residual_forward(x, params, strides=2, use_1x1conv=True,
                                mxu_dtype=jnp.bfloat16)
    jax.block_until_ready(out_bf16)
    np.testing.assert_allclose(np.asarray(out_bf16), np.asarray(ref),
                               rtol=5e-2, atol=5e-2)

    # Config B: identity-shortcut block (use_1x1conv=False, stride=1, Cin == C)
    N2, C2, L2 = 2, 8, 16
    x2 = jax.random.normal(jax.random.fold_in(key, 3), (N2, C2, L2), jnp.float32)
    params2 = _make_params(jax.random.fold_in(key, 4), C2, C2, use_1x1conv=False)
    ref2 = _ref_forward(x2, params2, strides=1, use_1x1conv=False)

    out2_f32 = residual_forward(x2, params2, strides=1, use_1x1conv=False,
                                mxu_dtype=jnp.float32)
    jax.block_until_ready(out2_f32)
    np.testing.assert_allclose(np.asarray(out2_f32), np.asarray(ref2),
                               rtol=1e-3, atol=1e-3)

    out2_bf16 = residual_forward(x2, params2, strides=1, use_1x1conv=False,
                                 mxu_dtype=jnp.bfloat16)
    jax.block_until_ready(out2_bf16)
    np.testing.assert_allclose(np.asarray(out2_bf16), np.asarray(ref2),
                               rtol=5e-2, atol=5e-2)

    print("KERNEL_OK")
</pallas_src>

<mosaic_0001>
module attributes {stable_mosaic.version = 11 : i64} {
  func.func @_residual_kernel(%arg0: memref<8x128xf32, #tpu.memory_space<vmem>>, %arg1: memref<8x128xf32, #tpu.memory_space<vmem>>, %arg2: memref<8x128xf32, #tpu.memory_space<vmem>>, %arg3: memref<1x128xf32, #tpu.memory_space<vmem>>, %arg4: memref<1x128xf32, #tpu.memory_space<vmem>>, %arg5: memref<1x128xf32, #tpu.memory_space<vmem>>, %arg6: memref<8x8xf32, #tpu.memory_space<vmem>>, %arg7: memref<8x8xf32, #tpu.memory_space<vmem>>, %arg8: memref<8x8xf32, #tpu.memory_space<vmem>>, %arg9: memref<8x1xf32, #tpu.memory_space<vmem>>, %arg10: memref<8x1xf32, #tpu.memory_space<vmem>>, %arg11: memref<8x1xf32, #tpu.memory_space<vmem>>, %arg12: memref<8x8xf32, #tpu.memory_space<vmem>>, %arg13: memref<8x8xf32, #tpu.memory_space<vmem>>, %arg14: memref<8x8xf32, #tpu.memory_space<vmem>>, %arg15: memref<8x1xf32, #tpu.memory_space<vmem>>, %arg16: memref<8x1xf32, #tpu.memory_space<vmem>>, %arg17: memref<8x1xf32, #tpu.memory_space<vmem>>, %arg18: memref<8x8xf32, #tpu.memory_space<vmem>>, %arg19: memref<8x1xf32, #tpu.memory_space<vmem>>, %arg20: memref<8x128xf32, #tpu.memory_space<vmem>>) attributes {dimension_semantics = [], scalar_prefetch = 0 : i64, scratch_operands = 0 : i64, tpu.core_type = #tpu.core_type<tc>} {
    %c0 = arith.constant 0 : index
    %c0_0 = arith.constant 0 : index
    %0 = vector.load %arg3[%c0, %c0_0] : memref<1x128xf32, #tpu.memory_space<vmem>>, vector<1x128xf32>
    %c0_1 = arith.constant 0 : index
    %c0_2 = arith.constant 0 : index
    %1 = vector.load %arg4[%c0_1, %c0_2] : memref<1x128xf32, #tpu.memory_space<vmem>>, vector<1x128xf32>
    %c0_3 = arith.constant 0 : index
    %c0_4 = arith.constant 0 : index
    %2 = vector.load %arg5[%c0_3, %c0_4] : memref<1x128xf32, #tpu.memory_space<vmem>>, vector<1x128xf32>
    %c0_5 = arith.constant 0 : index
    %c0_6 = arith.constant 0 : index
    %3 = vector.load %arg0[%c0_5, %c0_6] : memref<8x128xf32, #tpu.memory_space<vmem>>, vector<8x128xf32>
    %c0_7 = arith.constant 0 : index
    %c0_8 = arith.constant 0 : index
    %4 = vector.load %arg1[%c0_7, %c0_8] : memref<8x128xf32, #tpu.memory_space<vmem>>, vector<8x128xf32>
    %c0_9 = arith.constant 0 : index
    %c0_10 = arith.constant 0 : index
    %5 = vector.load %arg2[%c0_9, %c0_10] : memref<8x128xf32, #tpu.memory_space<vmem>>, vector<8x128xf32>
    %c0_11 = arith.constant 0 : index
    %c0_12 = arith.constant 0 : index
    %6 = vector.load %arg6[%c0_11, %c0_12] : memref<8x8xf32, #tpu.memory_space<vmem>>, vector<8x8xf32>
    %cst = arith.constant dense<0.000000e+00> : vector<8x128xf32>
    %7 = tpu.matmul %6, %3, %cst {dimension_numbers = #tpu.dot_dimension_numbers<[1], [0], [0], [1], [0, 0, 1, 1], [], []>} : vector<8x8xf32>, vector<8x128xf32>, vector<8x128xf32> -> vector<8x128xf32>
    %c0_13 = arith.constant 0 : index
    %c0_14 = arith.constant 0 : index
    %8 = vector.load %arg7[%c0_13, %c0_14] : memref<8x8xf32, #tpu.memory_space<vmem>>, vector<8x8xf32>
    %cst_15 = arith.constant dense<0.000000e+00> : vector<8x128xf32>
    %9 = tpu.matmul %8, %4, %cst_15 {dimension_numbers = #tpu.dot_dimension_numbers<[1], [0], [0], [1], [0, 0, 1, 1], [], []>} : vector<8x8xf32>, vector<8x128xf32>, vector<8x128xf32> -> vector<8x128xf32>
    %10 = arith.addf %7, %9 : vector<8x128xf32>
    %c0_16 = arith.constant 0 : index
    %c0_17 = arith.constant 0 : index
    %11 = vector.load %arg8[%c0_16, %c0_17] : memref<8x8xf32, #tpu.memory_space<vmem>>, vector<8x8xf32>
    %cst_18 = arith.constant dense<0.000000e+00> : vector<8x128xf32>
    %12 = tpu.matmul %11, %5, %cst_18 {dimension_numbers = #tpu.dot_dimension_numbers<[1], [0], [0], [1], [0, 0, 1, 1], [], []>} : vector<8x8xf32>, vector<8x128xf32>, vector<8x128xf32> -> vector<8x128xf32>
    %13 = arith.addf %10, %12 : vector<8x128xf32>
    %c0_19 = arith.constant 0 : index
    %c0_20 = arith.constant 0 : index
    %14 = vector.load %arg9[%c0_19, %c0_20] : memref<8x1xf32, #tpu.memory_space<vmem>>, vector<8x1xf32>
    %15 = vector.broadcast %14 : vector<8x1xf32> to vector<8x128xf32>
    %16 = arith.addf %13, %15 : vector<8x128xf32>
    %17 = vector.broadcast %0 : vector<1x128xf32> to vector<8x128xf32>
    %18 = arith.mulf %16, %17 : vector<8x128xf32>
    %cst_21 = arith.constant dense<0.000000e+00> : vector<8xf32>
    %19 = vector.multi_reduction <add>, %18, %cst_21 [1] : vector<8x128xf32> to vector<8xf32>
    %20 = vector.shape_cast %19 : vector<8xf32> to vector<8x1xf32>
    %21 = arith.mulf %18, %18 : vector<8x128xf32>
    %cst_22 = arith.constant dense<0.000000e+00> : vector<8xf32>
    %22 = vector.multi_reduction <add>, %21, %cst_22 [1] : vector<8x128xf32> to vector<8xf32>
    %23 = vector.shape_cast %22 : vector<8xf32> to vector<8x1xf32>
    %cst_23 = arith.constant 6.250000e-02 : f32
    %24 = vector.broadcast %cst_23 : f32 to vector<8x1xf32>
    %25 = arith.mulf %20, %24 : vector<8x1xf32>
    %cst_24 = arith.constant 6.250000e-02 : f32
    %26 = vector.broadcast %cst_24 : f32 to vector<8x1xf32>
    %27 = arith.mulf %23, %26 : vector<8x1xf32>
    %28 = arith.mulf %25, %25 : vector<8x1xf32>
    %29 = arith.subf %27, %28 : vector<8x1xf32>
    %c0_25 = arith.constant 0 : index
    %c0_26 = arith.constant 0 : index
    %30 = vector.load %arg10[%c0_25, %c0_26] : memref<8x1xf32, #tpu.memory_space<vmem>>, vector<8x1xf32>
    %cst_27 = arith.constant 9.99999974E-6 : f32
    %31 = vector.broadcast %cst_27 : f32 to vector<8x1xf32>
    %32 = arith.addf %29, %31 : vector<8x1xf32>
    %33 = math.rsqrt %32 : vector<8x1xf32>
    %34 = arith.mulf %30, %33 : vector<8x1xf32>
    %c0_28 = arith.constant 0 : index
    %c0_29 = arith.constant 0 : index
    %35 = vector.load %arg11[%c0_28, %c0_29] : memref<8x1xf32, #tpu.memory_space<vmem>>, vector<8x1xf32>
    %36 = arith.mulf %25, %34 : vector<8x1xf32>
    %37 = arith.subf %35, %36 : vector<8x1xf32>
    %38 = vector.broadcast %34 : vector<8x1xf32> to vector<8x128xf32>
    %39 = arith.mulf %16, %38 : vector<8x128xf32>
    %40 = vector.broadcast %37 : vector<8x1xf32> to vector<8x128xf32>
    %41 = arith.addf %39, %40 : vector<8x128xf32>
    %cst_30 = arith.constant 0.000000e+00 : f32
    %42 = vector.broadcast %cst_30 : f32 to vector<8x128xf32>
    %43 = arith.maximumf %41, %42 : vector<8x128xf32>
    %c1_i32 = arith.constant 1 : i32
    %44 = tpu.dynamic_rotate %43 by %c1_i32 dim 1 : vector<8x128xf32>, i32 -> vector<8x128xf32>
    %45 = vector.broadcast %1 : vector<1x128xf32> to vector<8x128xf32>
    %46 = arith.mulf %44, %45 : vector<8x128xf32>
    %c127_i32 = arith.constant 127 : i32
    %47 = tpu.dynamic_rotate %43 by %c127_i32 dim 1 : vector<8x128xf32>, i32 -> vector<8x128xf32>
    %48 = vector.broadcast %2 : vector<1x128xf32> to vector<8x128xf32>
    %49 = arith.mulf %47, %48 : vector<8x128xf32>
    %c0_31 = arith.constant 0 : index
    %c0_32 = arith.constant 0 : index
    %50 = vector.load %arg12[%c0_31, %c0_32] : memref<8x8xf32, #tpu.memory_space<vmem>>, vector<8x8xf32>
    %cst_33 = arith.constant dense<0.000000e+00> : vector<8x128xf32>
    %51 = tpu.matmul %50, %43, %cst_33 {dimension_numbers = #tpu.dot_dimension_numbers<[1], [0], [0], [1], [0, 0, 1, 1], [], []>} : vector<8x8xf32>, vector<8x128xf32>, vector<8x128xf32> -> vector<8x128xf32>
    %c0_34 = arith.constant 0 : index
    %c0_35 = arith.constant 0 : index
    %52 = vector.load %arg13[%c0_34, %c0_35] : memref<8x8xf32, #tpu.memory_space<vmem>>, vector<8x8xf32>
    %cst_36 = arith.constant dense<0.000000e+00> : vector<8x128xf32>
    %53 = tpu.matmul %52, %46, %cst_36 {dimension_numbers = #tpu.dot_dimension_numbers<[1], [0], [0], [1], [0, 0, 1, 1], [], []>} : vector<8x8xf32>, vector<8x128xf32>, vector<8x128xf32> -> vector<8x128xf32>
    %54 = arith.addf %51, %53 : vector<8x128xf32>
    %c0_37 = arith.constant 0 : index
    %c0_38 = arith.constant 0 : index
    %55 = vector.load %arg14[%c0_37, %c0_38] : memref<8x8xf32, #tpu.memory_space<vmem>>, vector<8x8xf32>
    %cst_39 = arith.constant dense<0.000000e+00> : vector<8x128xf32>
    %56 = tpu.matmul %55, %49, %cst_39 {dimension_numbers = #tpu.dot_dimension_numbers<[1], [0], [0], [1], [0, 0, 1, 1], [], []>} : vector<8x8xf32>, vector<8x128xf32>, vector<8x128xf32> -> vector<8x128xf32>
    %57 = arith.addf %54, %56 : vector<8x128xf32>
    %c0_40 = arith.constant 0 : index
    %c0_41 = arith.constant 0 : index
    %58 = vector.load %arg15[%c0_40, %c0_41] : memref<8x1xf32, #tpu.memory_space<vmem>>, vector<8x1xf32>
    %59 = vector.broadcast %58 : vector<8x1xf32> to vector<8x128xf32>
    %60 = arith.addf %57, %59 : vector<8x128xf32>
    %61 = vector.broadcast %0 : vector<1x128xf32> to vector<8x128xf32>
    %62 = arith.mulf %60, %61 : vector<8x128xf32>
    %cst_42 = arith.constant dense<0.000000e+00> : vector<8xf32>
    %63 = vector.multi_reduction <add>, %62, %cst_42 [1] : vector<8x128xf32> to vector<8xf32>
    %64 = vector.shape_cast %63 : vector<8xf32> to vector<8x1xf32>
    %65 = arith.mulf %62, %62 : vector<8x128xf32>
    %cst_43 = arith.constant dense<0.000000e+00> : vector<8xf32>
    %66 = vector.multi_reduction <add>, %65, %cst_43 [1] : vector<8x128xf32> to vector<8xf32>
    %67 = vector.shape_cast %66 : vector<8xf32> to vector<8x1xf32>
    %cst_44 = arith.constant 6.250000e-02 : f32
    %68 = vector.broadcast %cst_44 : f32 to vector<8x1xf32>
    %69 = arith.mulf %64, %68 : vector<8x1xf32>
    %cst_45 = arith.constant 6.250000e-02 : f32
    %70 = vector.broadcast %cst_45 : f32 to vector<8x1xf32>
    %71 = arith.mulf %67, %70 : vector<8x1xf32>
    %72 = arith.mulf %69, %69 : vector<8x1xf32>
    %73 = arith.subf %71, %72 : vector<8x1xf32>
    %c0_46 = arith.constant 0 : index
    %c0_47 = arith.constant 0 : index
    %74 = vector.load %arg16[%c0_46, %c0_47] : memref<8x1xf32, #tpu.memory_space<vmem>>, vector<8x1xf32>
    %cst_48 = arith.constant 9.99999974E-6 : f32
    %75 = vector.broadcast %cst_48 : f32 to vector<8x1xf32>
    %76 = arith.addf %73, %75 : vector<8x1xf32>
    %77 = math.rsqrt %76 : vector<8x1xf32>
    %78 = arith.mulf %74, %77 : vector<8x1xf32>
    %c0_49 = arith.constant 0 : index
    %c0_50 = arith.constant 0 : index
    %79 = vector.load %arg17[%c0_49, %c0_50] : memref<8x1xf32, #tpu.memory_space<vmem>>, vector<8x1xf32>
    %80 = arith.mulf %69, %78 : vector<8x1xf32>
    %81 = arith.subf %79, %80 : vector<8x1xf32>
    %82 = vector.broadcast %78 : vector<8x1xf32> to vector<8x128xf32>
    %83 = arith.mulf %60, %82 : vector<8x128xf32>
    %84 = vector.broadcast %81 : vector<8x1xf32> to vector<8x128xf32>
    %85 = arith.addf %83, %84 : vector<8x128xf32>
    %c0_51 = arith.constant 0 : index
    %c0_52 = arith.constant 0 : index
    %86 = vector.load %arg18[%c0_51, %c0_52] : memref<8x8xf32, #tpu.memory_space<vmem>>, vector<8x8xf32>
    %cst_53 = arith.constant dense<0.000000e+00> : vector<8x128xf32>
    %87 = tpu.matmul %86, %3, %cst_53 {dimension_numbers = #tpu.dot_dimension_numbers<[1], [0], [0], [1], [0, 0, 1, 1], [], []>} : vector<8x8xf32>, vector<8x128xf32>, vector<8x128xf32> -> vector<8x128xf32>
    %c0_54 = arith.constant 0 : index
    %c0_55 = arith.constant 0 : index
    %88 = vector.load %arg19[%c0_54, %c0_55] : memref<8x1xf32, #tpu.memory_space<vmem>>, vector<8x1xf32>
    %89 = vector.broadcast %88 : vector<8x1xf32> to vector<8x128xf32>
    %90 = arith.addf %87, %89 : vector<8x128xf32>
    %91 = arith.addf %85, %90 : vector<8x128xf32>
    %cst_56 = arith.constant 0.000000e+00 : f32
    %92 = vector.broadcast %cst_56 : f32 to vector<8x128xf32>
    %93 = arith.maximumf %91, %92 : vector<8x128xf32>
    %c0_57 = arith.constant 0 : index
    %c0_58 = arith.constant 0 : index
    %94 = vector.load %arg20[%c0_57, %c0_58] : memref<8x128xf32, #tpu.memory_space<vmem>>, vector<8x128xf32>
    tpu.vector_store %arg20[%c0_57, %c0_58], %93 {strides = array<i32>} : memref<8x128xf32, #tpu.memory_space<vmem>>, vector<8x128xf32>,
    return
  }
}

</mosaic_0001>

<bundles_post_ra>
// kernel: tpu_custom_call.1
= control target key start
LH: loop header
LB: loop body
LE: loop exit
PB: predicated region body
PF: predicated region fallthrough
CT: control target
= control target key end

     0   :  { %s1119_s0 = inlined_call_operand.vmem [shape: f32[8,128], index: 0, kind: input, shape index: {}]   ;;  %s1120_s1 = inlined_call_operand.vmem [shape: f32[8,128], index: 1, kind: input, shape index: {}]   ;;  %s1121_s2 = inlined_call_operand.vmem [shape: f32[8,128], index: 2, kind: input, shape index: {}]   ;;  %s1122_s3 = inlined_call_operand.vmem [shape: f32[1,128], index: 3, kind: input, shape index: {}]   ;;  %s1123_s4 = inlined_call_operand.hbm [shape: f32[1,128], index: 4, kind: input, shape index: {}]   ;;  %s1124_s5 = inlined_call_operand.hbm [shape: f32[1,128], index: 5, kind: input, shape index: {}]   ;;  %s1125_s6 = inlined_call_operand.vmem [shape: f32[8,8], index: 6, kind: input, shape index: {}]   ;;  %s1126_s7 = inlined_call_operand.vmem [shape: f32[8,8], index: 7, kind: input, shape index: {}]   ;;  %s1127_s8 = inlined_call_operand.vmem [shape: f32[8,8], index: 8, kind: input, shape index: {}]   ;;  %s1128_s9 = inlined_call_operand.vmem [shape: f32[8,1], index: 9, kind: input, shape index: {}]   ;;  %s1129_s10 = inlined_call_operand.vmem [shape: f32[8,1], index: 10, kind: input, shape index: {}]   ;;  %s1130_s11 = inlined_call_operand.vmem [shape: f32[8,1], index: 11, kind: input, shape index: {}]   ;;  %s1131_s12 = inlined_call_operand.vmem [shape: f32[8,8], index: 12, kind: input, shape index: {}]   ;;  %s1132_s13 = inlined_call_operand.vmem [shape: f32[8,8], index: 13, kind: input, shape index: {}]   ;;  %s1133_s14 = inlined_call_operand.vmem [shape: f32[8,8], index: 14, kind: input, shape index: {}]   ;;  %s1134_s15 = inlined_call_operand.vmem [shape: f32[8,1], index: 15, kind: input, shape index: {}]   ;;  %s1135_s16 = inlined_call_operand.vmem [shape: f32[8,1], index: 16, kind: input, shape index: {}]   ;;  %s1136_s17 = inlined_call_operand.vmem [shape: f32[8,1], index: 17, kind: input, shape index: {}]   ;;  %s1137_s18 = inlined_call_operand.vmem [shape: f32[8,8], index: 18, kind: input, shape index: {}]   ;;  %s1138_s19 = inlined_call_operand.vmem [shape: f32[8,1], index: 19, kind: input, shape index: {}]   ;;  %s1139_s20 = inlined_call_operand.hbm [shape: f32[8,128], index: 20, kind: output, shape index: {}]  }
   0x1   :  { %1141 = sst [smem:[#allocation11_spill]] %s1119_s0 }
   0x2   :  { %1142 = sst [smem:[#allocation12_spill]] %s1120_s1 }
   0x3   :  { %1143 = sst [smem:[#allocation13_spill]] %s1121_s2 }
   0x4   :  { %1144 = sst [smem:[#allocation14_spill]] %s1122_s3 }
   0x5   :  { %1145 = sst [smem:[#allocation15_spill]] %s1123_s4 }
   0x6   :  { %25 = vsyncpa [#allocation3], 0 }
   0x7   :  { %26 = vsyncpa [#allocation6], 0 }
   0x8   :  { %27 = vsyncpa [#allocation4], 0  ;;  %s884_s1 = smov [#allocation2]   ;;  %s885_s23 = smov [#allocation5]  }
   0x9   :  { %s42_s22 = sshll.u32 %s884_s1, 4  ;;  %s52_s24 = sshll.u32 %s885_s23, 4  ;;  %s43_s22 = int_to_ptr.vmem [resolvable:$true] %s42_s22  ;;  %s53_s24 = int_to_ptr.vmem [resolvable:$true] %s52_s24 }
   0xa   :  { %s1146_s3 = sld [smem:[#allocation15_spill]] }
  0x10   :  { %s812_s26 = scalar_lea.hbm %s1146_s3, 16 }
  0x11   :  { %p813_p0 = scmp.ne.s32.totalorder %s1146_s3, %s812_s26  ;;  %p816_p1 = scmp.lt.u32.totalorder %s812_s26, %s1146_s3 }
  0x13   :  { %p818_p2 = pnand %p816_p1, %p813_p0 }
  0x15   :  { %821 = shalt.err (!%p818_p2)
}
  0x16   :  { %s822_s30 = scalar_lea.vmem %s43_s22, 16  ;;  %s826_s0 = scalar_lea.vmem %s43_s22, 32 }
  0x17   :  { %p823_p3 = scmp.ne.s32.totalorder %s43_s22, %s822_s30  ;;  %p827_p4 = scmp.lt.s32.totalorder %s43_s22, %s43_s22 }
  0x18   :  { %p828_p5 = scmp.lt.s32.totalorder %s826_s0, %s822_s30 }
  0x1a   :  { %p829_p6 = por %p828_p5, %p827_p4 }
  0x1c   :  { %p830_p7 = pnand %p829_p6, %p823_p3 }
  0x1e   :  { %833 = shalt.err (!%p830_p7)
}
  0x1f   :  { %45 = dma.hbm_to_vmem [thread:$0]  %s1146_s3, 16, %s43_s22, [#allocation3]  }
  0x20   :  { %s834_s25 = scalar_lea.hbm %s1124_s5, 16 }
  0x21   :  { %p835_p8 = scmp.ne.s32.totalorder %s1124_s5, %s834_s25  ;;  %p838_p9 = scmp.lt.u32.totalorder %s834_s25, %s1124_s5 }
  0x23   :  { %p840_p10 = pnand %p838_p9, %p835_p8 }
  0x25   :  { %843 = shalt.err (!%p840_p10)
}
  0x26   :  { %s844_s29 = scalar_lea.vmem %s53_s24, 16  ;;  %s848_s30 = scalar_lea.vmem %s53_s24, 32 }
  0x27   :  { %p845_p11 = scmp.ne.s32.totalorder %s53_s24, %s844_s29  ;;  %p849_p12 = scmp.lt.s32.totalorder %s53_s24, %s53_s24 }
  0x28   :  { %p850_p13 = scmp.lt.s32.totalorder %s848_s30, %s844_s29 }
  0x2a   :  { %p851_p0 = por %p850_p13, %p849_p12 }
  0x2c   :  { %p852_p1 = pnand %p851_p0, %p845_p11 }
  0x2e   :  { %855 = shalt.err (!%p852_p1)
}
  0x2f   :  { %55 = dma.hbm_to_vmem [thread:$0]  %s1124_s5, 16, %s53_s24, [#allocation6]  }
  0x30   :  { %878 = dma.done.wait [#allocation3], 16  }
  0x31   :  { %879 = vsyncadd [#allocation3], 4294967280 }
  0x32   :  { %880 = dma.done.wait [#allocation6], 16  }
  0x33   :  { %881 = vsyncadd [#allocation6], 4294967280  ;;  %v886_v0 = vmov 0.0   ;;  %vm887_vm0 = vmmov 0   ;;  %v888_v1 = vmov 0   ;;  %vm98_vm1 = vcmask 64512  }
  0x34   :  { %763 = vmatprep.subr.mxu0 %v886_v0  ;;  %768 = vmatprep.subr.mxu1 %v886_v0  ;;  %s1147_s0 = sld [smem:[#allocation12_spill]]  ;;  %s1148_s23 = sld [smem:[#allocation11_spill]]  ;;  %v97_v4 = vld [vmem:[%s1126_s7] sm:$0xff] }
  0x35   :  { %765 = vmatprep.mubr.msk.f32.mxu0 %vm887_vm0, %v886_v0  ;;  %770 = vmatprep.mubr.msk.f32.mxu1 %vm887_vm0, %v886_v0  ;;  %v96_v5 = vld [vmem:[%s1125_s6] sm:$0xff]  ;;  %s1149_s29 = sld [smem:[#allocation13_spill]] }
  0x36   :  { %806 = vset.pattern.permute.xlu0 %v888_v1  ;;  %807 = vset.pattern.permute.xlu1 %v888_v1  ;;  %v320_v7 = vld [vmem:[%s1128_s9] sm:$0xff]  ;;  %s1150_s9 = sld [smem:[#allocation14_spill]] }
  0x37   :  { %v245_v8 = vld [vmem:[%s1127_s8] sm:$0xff]  ;;  %323 = vperm.xlu0 %806, %v320_v7  }
  0x38   :  { %v343_v29 = vld [vmem:[%s1129_s10] sm:$0xff]  ;;  %s889_s10 = smov 1  }
  0x39   :  { %v347_v32 = vld [vmem:[%s1130_s11] sm:$0xff]  ;;  %s890_s11 = smov 127  }
  0x3a   :  { %v94_v2 = vld [vmem:[%s1147_s0] sm:$0xff] }
  0x3b   :  { %v93_v3 = vld [vmem:[%s1148_s23] sm:$0xff]  ;;  %764 = vmatpush3.msra.mxu0 %v94_v2 }
  0x3c   :  { %769 = vmatpush3.msra.mxu1 %v93_v3  ;;  %v95_v6 = vld [vmem:[%s1149_s29] sm:$0xff]  ;;  %766 = vmatmul.mubr.msk.f32.vlgmr.msra.gmra.mrb[0].mxu0 %vm98_vm1, %v97_v4 }
  0x3d   :  { %771 = vmatmul.mubr.msk.f32.vlgmr.msra.gmra.mrb[0].mxu1 %vm98_vm1, %v96_v5  ;;  %773 = vmatprep.subr.mxu0 %v886_v0  ;;  %v1063_v18 = vld [vmem:[%s1150_s9] ss:$0 sm:$0xff]  ;;  %v744_v46 = vld [vmem:[#allocation5] ss:$0 sm:$0xff] }
  0x3e   :  { %775 = vmatprep.mubr.msk.f32.mxu0 %vm887_vm0, %v886_v0  ;;  %774 = vmatpush3.msra.mxu0 %v95_v6  ;;  %v381_v40 = vld [vmem:[%s1131_s12] sm:$0xff] }
  0x3f   :  { %783 = vmatprep.subr.mxu0 %v886_v0  ;;  %778 = vmatprep.subr.mxu1 %v886_v0  ;;  %v604_v41 = vld [vmem:[%s1134_s15] sm:$0xff] }
  0x40   :  { %776 = vmatmul.mubr.msk.f32.vlgmr.msra.gmra.mrb[2].mxu0 %vm98_vm1, %v245_v8  ;;  %780 = vmatprep.mubr.msk.f32.mxu1 %vm887_vm0, %v886_v0  ;;  %v743_v42 = vld [vmem:[#allocation2] ss:$0 sm:$0xff] }
  0x41   :  { %785 = vmatprep.mubr.msk.f32.mxu0 %vm887_vm0, %v886_v0  ;;  %v382_v45 = vld [vmem:[%s1132_s13] sm:$0xff] }
  0x42   :  { %v529_v49 = vld [vmem:[%s1133_s14] sm:$0xff] }
  0x43   :  { %v640_v52 = vld [vmem:[%s1137_s18] sm:$0xff] }
  0x44   :  { %v621_v6 = vld [vmem:[%s1135_s16] sm:$0xff]  ;;  %s891_s16 = smov [#allocation7]  }
  0x45   :  { %s729_s7 = sshll.u32 %s891_s16, 4  ;;  %s730_s7 = int_to_ptr.vmem [resolvable:$true] %s729_s7 }
  0x46   :  { %p861_p3 = scmp.lt.s32.totalorder %s730_s7, %s730_s7 }
  0xb6   :  { %v324_v15 = vpop.permute.xlu0 %323 }
 0x10f   :  { %v168_v9 = vpop.f32.mrb[0].mxu0 }
 0x110   :  { %v241_v10 = vpop.f32.mrb[0].mxu1  ;;  %v767_v12 = vpop.f32.mrb[1].mxu0 }
 0x111   :  { %v242_v11 = vadd.f32 %v241_v10, %v168_v9  ;;  %v772_v13 = vpop.f32.mrb[1].mxu1  ;;  %v625_v9 = vld [vmem:[%s1136_s17] sm:$0xff]  ;;  %s856_s17 = scalar_lea.vmem %s730_s7, 128 }
 0x112   :  { %v641_v12 = vld [vmem:[%s1138_s19] sm:$0xff]  ;;  %p857_p2 = scmp.ne.s32.totalorder %s730_s7, %s856_s17  ;;  %p862_p4 = scmp.lt.s32.totalorder %s856_s17, %s856_s17 }
 0x113   :  { %v315_v14 = vpop.f32.mrb[2].mxu0 }
 0x114   :  { %v319_v16 = vadd.f32 %v315_v14, %v242_v11  ;;  %v777_v17 = vpop.f32.mrb[3].mxu0  ;;  %p863_p5 = por %p862_p4, %p861_p3 }
 0x116   :  { %v326_v19 = vadd.f32 %v324_v15, %v319_v16  ;;  %p864_p6 = pnand %p863_p5, %p857_p2 }
 0x118   :  { %v333_v20 = vmul.f32 %v1063_v18, %v326_v19 }
 0x11a   :  { %334 = vadd.xlane.f32.xlu0 %v333_v20  ;;  %v336_v21 = vmul.f32 %v333_v20, %v333_v20 }
 0x11c   :  { %337 = vadd.xlane.f32.xlu1 %v336_v21 }
 0x1a7   :  { %v335_v22 = vpop.xlane.xlu0 %334 }
 0x1a8   :  { %v339_v23 = vmul.f32 0.0625, %v335_v22 }
 0x1a9   :  { %v338_v24 = vpop.xlane.xlu1 %337 }
 0x1aa   :  { %v341_v25 = vmul.f32 %v339_v23, %v339_v23  ;;  %v340_v26 = vmul.f32 0.0625, %v338_v24 }
 0x1ac   :  { %v342_v27 = vsub.f32 %v340_v26, %v341_v25 }
 0x1ae   :  { %v344_v28 = vadd.f32 1e-05, %v342_v27 }
 0x1b0   :  { %808 = vrsqrt.f32 %v344_v28 }
 0x1ba   :  { %v809_v30 = vpop.eup %808 }
 0x1bb   :  { %v346_v31 = vmul.f32 %v809_v30, %v343_v29 }
 0x1bd   :  { %352 = vperm.xlu1 %807, %v346_v31   ;;  %v348_v33 = vmul.f32 %v346_v31, %v339_v23 }
 0x1bf   :  { %v349_v34 = vsub.f32 %v347_v32, %v348_v33 }
 0x1c1   :  { %358 = vperm.xlu1 %807, %v349_v34  }
 0x23c   :  { %v353_v35 = vpop.permute.xlu1 %352 }
 0x23d   :  { %v355_v36 = vmul.f32 %v353_v35, %v326_v19 }
 0x240   :  { %v359_v37 = vpop.permute.xlu1 %358 }
 0x241   :  { %v361_v38 = vadd.f32 %v359_v37, %v355_v36 }
 0x243   :  { %v362_v39 = vmax.f32 %v361_v38, 0.0 }
 0x245   :  { %363 = vrot.lane.b32.xlu1 %v362_v39, %s889_s10  ;;  %784 = vmatpush3.msra.mxu0 %v362_v39 }
 0x246   :  { %786 = vmatmul.mubr.msk.f32.vlgmr.msra.gmra.mrb[4].mxu0 %vm98_vm1, %v381_v40  ;;  %793 = vmatprep.subr.mxu0 %v886_v0 }
 0x247   :  { %794 = vmatpush3.msra.mxu0 %v93_v3  ;;  %795 = vmatprep.mubr.msk.f32.mxu0 %vm887_vm0, %v886_v0 }
 0x249   :  { %372 = vrot.lane.b32.xlu1 %v362_v39, %s890_s11 }
 0x24a   :  { %796 = vmatmul.mubr.msk.f32.vlgmr.msra.gmra.mrb[6].mxu0 %vm98_vm1, %v640_v52 }
 0x24d   :  { %607 = vperm.xlu1 %807, %v604_v41  }
 0x2b7   :  { %v364_v43 = vpop.permute.xlu1 %363 }
 0x2b8   :  { %v371_v44 = vmul.f32 %v743_v42, %v364_v43 }
 0x2ba   :  { %779 = vmatpush3.msra.mxu1 %v371_v44 }
 0x2bb   :  { %781 = vmatmul.mubr.msk.f32.vlgmr.msra.gmra.mrb[2].mxu1 %vm98_vm1, %v382_v45  ;;  %v373_v47 = vpop.permute.xlu1 %372  ;;  %788 = vmatprep.subr.mxu1 %v886_v0 }
 0x2bc   :  { %v380_v48 = vmul.f32 %v744_v46, %v373_v47  ;;  %790 = vmatprep.mubr.msk.f32.mxu1 %vm887_vm0, %v886_v0 }
 0x2be   :  { %789 = vmatpush3.msra.mxu1 %v380_v48 }
 0x2bf   :  { %791 = vmatmul.mubr.msk.f32.vlgmr.msra.gmra.mrb[4].mxu1 %vm98_vm1, %v529_v49 }
 0x2cc   :  { %v608_v59 = vpop.permute.xlu1 %607 }
 0x319   :  { %v525_v50 = vpop.f32.mrb[4].mxu0 }
 0x31a   :  { %v787_v51 = vpop.f32.mrb[5].mxu0 }
 0x31d   :  { %v716_v13 = vpop.f32.mrb[6].mxu0 }
 0x31e   :  { %v797_v14 = vpop.f32.mrb[7].mxu0 }
 0x38e   :  { %v452_v53 = vpop.f32.mrb[2].mxu1 }
 0x38f   :  { %v526_v54 = vadd.f32 %v525_v50, %v452_v53  ;;  %v782_v55 = vpop.f32.mrb[3].mxu1 }
 0x392   :  { %v599_v56 = vpop.f32.mrb[4].mxu1 }
 0x393   :  { %v603_v57 = vadd.f32 %v599_v56, %v526_v54  ;;  %v792_v58 = vpop.f32.mrb[5].mxu1 }
 0x395   :  { %v610_v60 = vadd.f32 %v608_v59, %v603_v57 }
 0x397   :  { %v611_v61 = vmul.f32 %v1063_v18, %v610_v60 }
 0x399   :  { %612 = vadd.xlane.f32.xlu0 %v611_v61  ;;  %v614_v62 = vmul.f32 %v611_v61, %v611_v61 }
 0x39b   :  { %615 = vadd.xlane.f32.xlu1 %v614_v62 }
 0x426   :  { %v613_v63 = vpop.xlane.xlu0 %612 }
 0x427   :  { %v617_v0 = vmul.f32 0.0625, %v613_v63 }
 0x428   :  { %v616_v1 = vpop.xlane.xlu1 %615 }
 0x429   :  { %v619_v2 = vmul.f32 %v617_v0, %v617_v0  ;;  %v618_v3 = vmul.f32 0.0625, %v616_v1 }
 0x42b   :  { %v620_v4 = vsub.f32 %v618_v3, %v619_v2 }
 0x42d   :  { %v622_v5 = vadd.f32 1e-05, %v620_v4 }
 0x42f   :  { %810 = vrsqrt.f32 %v622_v5 }
 0x439   :  { %v811_v7 = vpop.eup %810 }
 0x43a   :  { %v624_v8 = vmul.f32 %v811_v7, %v621_v6 }
 0x43c   :  { %630 = vperm.xlu0 %806, %v624_v8   ;;  %v626_v10 = vmul.f32 %v624_v8, %v617_v0 }
 0x43e   :  { %v627_v11 = vsub.f32 %v625_v9, %v626_v10 }
 0x440   :  { %636 = vperm.xlu0 %806, %v627_v11  }
 0x444   :  { %644 = vperm.xlu0 %806, %v641_v12  }
 0x4bb   :  { %v631_v15 = vpop.permute.xlu0 %630 }
 0x4bc   :  { %v633_v17 = vmul.f32 %v631_v15, %v610_v60 }
 0x4bf   :  { %v637_v16 = vpop.permute.xlu0 %636 }
 0x4c0   :  { %v639_v19 = vadd.f32 %v637_v16, %v633_v17 }
 0x4c3   :  { %v645_v18 = vpop.permute.xlu0 %644 }
 0x4c4   :  { %v717_v20 = vadd.f32 %v716_v13, %v645_v18 }
 0x4c6   :  { %v720_v21 = vadd.f32 %v717_v20, %v639_v19 }
 0x4c8   :  { %v721_v22 = vmax.f32 %v720_v21, 0.0 }
 0x4ca   :  { %722 = vst [vmem:[#allocation7] sm:$0xff] %v721_v22 }
 0x4cb   :  { %867 = shalt.err (!%p864_p6)
}
 0x4cc   :  { %s868_s6 = scalar_lea.hbm %s1139_s20, 128 }
 0x4cd   :  { %p869_p7 = scmp.ne.s32.totalorder %s1139_s20, %s868_s6  ;;  %p872_p8 = scmp.lt.u32.totalorder %s868_s6, %s1139_s20 }
 0x4cf   :  { %p874_p9 = pnand %p872_p8, %p869_p7 }
 0x4d1   :  { %877 = shalt.err (!%p874_p9)
}
 0x4d2   :  { %732 = dma.vmem_to_hbm [thread:$0]  %s730_s7, 128, %s1139_s20, [#allocation4]  }
 0x4d3   :  { %882 = dma.done.wait [#allocation4], 128  }
 0x4d4   :  { %883 = vsyncadd [#allocation4], 4294967168 }
 0x4d5   :  { %736 = vsyncpa [#allocation3], 1 }
 0x4d6   :  { %737 = vsyncpa [#allocation6], 1 }
 0x4d7   :  { %738 = vsyncpa [#allocation4], 1 }

</bundles_post_ra>
